<compile_context>
chip_gen: v7x
topology: tpu7x:2x2x1
jax: 0.10.0
libtpu: 0.0.40
codegen_flags: <defaults>
</compile_context>

<pallas_src>
import functools

import jax
import jax.numpy as jnp
from jax.experimental import pallas as pl
from jax.experimental.pallas import tpu as pltpu


def arm_kernel(x_ref, a_ref, b1_ref, g_ref, b2_ref, o_ref,
               *, H, W, CIN, COUT, B_TILE):
  """One batch tile per grid step.

  x_ref  : (B_TILE, H+2, (W+2)*CIN) f32   padded input, lanes = (W+2)*CIN
  a_ref  : (3, (W+2)*CIN, W*COUT)   bf16  banded conv weights (BN1 scale folded)
  b1_ref : (1, W*COUT)              f32   BN1 shift, tiled over W
  g_ref  : (W*COUT, W*COUT)         f32   GAP(1/HW) + 1x1 conv + BN2 scale, tiled
  b2_ref : (1, W*COUT)              f32   BN2 shift, tiled over W
  o_ref  : (B_TILE, H, W*COUT)      f32   lane-dense output
  """
  WC = W * COUT
  feats = []
  rowsums = []
  for b in range(B_TILE):                      # unrolled small batch tile
    acc = jnp.zeros((H, WC), jnp.float32)
    for dy in range(3):                        # 3 row-matmuls, K=(W+2)*CIN
      lhs = x_ref[b, dy:dy + H, :].astype(jnp.bfloat16)
      acc = acc + jnp.dot(lhs, a_ref[dy],
                          preferred_element_type=jnp.float32)
    # BN1 shift (scale already folded into a_ref) + ReLU.
    feat = jnp.maximum(acc + b1_ref[...], 0.0)         # (H, WC), lane-dense
    feats.append(feat)
    rowsums.append(jnp.sum(feat, axis=0, keepdims=True))   # (1, WC)

  # Attention path, batched over the tile: GAP over W + 1x1 conv + BN2 scale
  # are all folded into g_ref, so one (B_TILE, WC) @ (WC, WC) matmul suffices.
  rs = jnp.concatenate(rowsums, axis=0)                 # (B_TILE, WC)
  att = jnp.dot(rs, g_ref[...], preferred_element_type=jnp.float32)
  att = jax.nn.sigmoid(att + b2_ref[...])               # (B_TILE, WC), already
                                                        # channel-tiled over W
  for b in range(B_TILE):
    o_ref[b, :, :] = (feats[b] * att[b:b + 1, :]).astype(o_ref.dtype)


@functools.partial(jax.jit, static_argnames=("b_tile",))
def attention_refinement_forward(x_nchw, params, b_tile=1):
  """x_nchw: (N, CIN, H, W) float32 -> (N, COUT, H, W) float32."""
  w1, g1, be1, m1, v1, wa, g2, be2, m2, v2 = params
  N, CIN, H, W = x_nchw.shape
  COUT = w1.shape[0]
  WC = W * COUT
  WPC = (W + 2) * CIN
  eps = 1e-5

  # ---- fold BN (eval mode). Scale goes into the weights, shift stays additive.
  s1 = g1 * jax.lax.rsqrt(v1 + eps)
  b1 = be1 - m1 * s1
  s2 = g2 * jax.lax.rsqrt(v2 + eps)
  b2 = be2 - m2 * s2

  # ---- banded 3x3 conv weights: A[dy, j*CIN+ci, w*COUT+co] = s1[co]*w1[co,ci,dy,j-w]
  w1f = w1 * s1[:, None, None, None]                       # (COUT,CIN,3,3)
  kmat = jnp.transpose(w1f, (2, 3, 1, 0))                  # (dy,dx,ci,co)
  j_idx = jnp.arange(W + 2)[None, :, None]
  w_idx = jnp.arange(W)[None, None, :]
  dx_idx = jnp.arange(3)[:, None, None]
  band = (j_idx == w_idx + dx_idx).astype(jnp.float32)     # (3, W+2, W)
  A = jnp.einsum("xjw,yxio->yjiwo", band, kmat).reshape(3, WPC, WC)
  A = A.astype(jnp.bfloat16)                               # bf16 MXU operand

  b1_t = jnp.tile(b1.reshape(1, COUT), (1, W))             # (1, WC)

  # ---- GAP(1/HW) + 1x1 conv + BN2 scale folded into one (WC, WC) matrix.
  waf = wa[:, :, 0, 0] * s2[:, None]                       # (co, ci)
  G = jnp.tile(waf.T, (W, W)) / (H * W)                    # (WC, WC)
  b2_t = jnp.tile(b2.reshape(1, COUT), (1, W))             # (1, WC)

  # ---- input glue: NCHW -> NHWC, pad H/W by 1, flatten (W+2)*CIN onto lanes.
  # Single jitted expression so XLA fuses transpose+pad+reshape (one HBM pass).
  xp = jnp.pad(jnp.transpose(x_nchw, (0, 2, 3, 1)),
               ((0, 0), (1, 1), (1, 1), (0, 0))).astype(jnp.float32)
  xp2d = xp.reshape(N, H + 2, WPC)

  # ---- batch tiling (amortize per-grid-step overhead for tiny images).
  nb = pl.cdiv(N, b_tile)
  n_pad = nb * b_tile
  if n_pad != N:
    xp2d = jnp.pad(xp2d, ((0, n_pad - N), (0, 0), (0, 0)))

  kernel = functools.partial(arm_kernel, H=H, W=W, CIN=CIN, COUT=COUT,
                             B_TILE=b_tile)

  out2d = pl.pallas_call(
      kernel,
      out_shape=jax.ShapeDtypeStruct((n_pad, H, WC), jnp.float32),
      grid_spec=pltpu.PrefetchScalarGridSpec(
          num_scalar_prefetch=0,
          grid=(nb,),
          in_specs=[
              pl.BlockSpec((b_tile, H + 2, WPC), lambda n: (n, 0, 0)),
              pl.BlockSpec((3, WPC, WC), lambda n: (0, 0, 0)),
              pl.BlockSpec((1, WC), lambda n: (0, 0)),
              pl.BlockSpec((WC, WC), lambda n: (0, 0)),
              pl.BlockSpec((1, WC), lambda n: (0, 0)),
          ],
          out_specs=pl.BlockSpec((b_tile, H, WC), lambda n: (n, 0, 0)),
      ),
      compiler_params=pltpu.CompilerParams(
          dimension_semantics=("parallel",)),   # batch axis: independent steps
  )(xp2d, A, b1_t, G, b2_t)

  # lane-dense (N, H, W*COUT) -> NHWC -> NCHW (PyTorch convention), fused by XLA.
  out = out2d[:N].reshape(N, H, W, COUT)
  return jnp.transpose(out, (0, 3, 1, 2))


def reference_forward(x_nchw, params):
  """Pure-JAX NCHW reference of the same forward (for verification)."""
  w1, g1, be1, m1, v1, wa, g2, be2, m2, v2 = params
  eps = 1e-5

  def bn(x, g, b, m, v):
    g, b, m, v = (t.reshape(1, -1, 1, 1) for t in (g, b, m, v))
    return (x - m) / jnp.sqrt(v + eps) * g + b

  feat = jax.lax.conv_general_dilated(
      x_nchw, w1, window_strides=(1, 1), padding=((1, 1), (1, 1)),
      dimension_numbers=("NCHW", "OIHW", "NCHW"))
  feat = jax.nn.relu(bn(feat, g1, be1, m1, v1))
  atten = jnp.mean(feat, axis=(2, 3), keepdims=True)
  atten = jax.lax.conv_general_dilated(
      atten, wa, window_strides=(1, 1), padding="VALID",
      dimension_numbers=("NCHW", "OIHW", "NCHW"))
  atten = jax.nn.sigmoid(bn(atten, g2, be2, m2, v2))
  return feat * atten


def make_params(key, in_chan, out_chan):
  """Deterministic parameter init (kaiming-style normal for convs,
  BN params perturbed deterministically, eval-mode running stats)."""
  k1, k2, k3, k4, k5, k6 = jax.random.split(key, 6)
  fan_in1 = in_chan * 3 * 3
  std1 = (2.0 / (1.0 + 1.0 ** 2) / fan_in1) ** 0.5   # kaiming_normal_(a=1)
  w1 = std1 * jax.random.normal(k1, (out_chan, in_chan, 3, 3), jnp.float32)
  fan_in2 = out_chan * 1 * 1
  std2 = (2.0 / (1.0 + 1.0 ** 2) / fan_in2) ** 0.5
  wa = std2 * jax.random.normal(k2, (out_chan, out_chan, 1, 1), jnp.float32)

  g1 = 1.0 + 0.1 * jax.random.normal(k3, (out_chan,), jnp.float32)
  be1 = 0.1 * jax.random.normal(k4, (out_chan,), jnp.float32)
  m1 = jnp.zeros((out_chan,), jnp.float32)
  v1 = jnp.ones((out_chan,), jnp.float32)

  g2 = 1.0 + 0.1 * jax.random.normal(k5, (out_chan,), jnp.float32)
  be2 = 0.1 * jax.random.normal(k6, (out_chan,), jnp.float32)
  m2 = jnp.zeros((out_chan,), jnp.float32)
  v2 = jnp.ones((out_chan,), jnp.float32)

  return (w1, g1, be1, m1, v1, wa, g2, be2, m2, v2)


if __name__ == "__main__":
  N, CIN, COUT, H, W = 2, 4, 8, 16, 16
  key = jax.random.PRNGKey(0)
  kx, kp = jax.random.split(key)
  x = jax.random.normal(kx, (N, CIN, H, W), jnp.float32)
  params = make_params(kp, CIN, COUT)

  # b_tile=2 -> whole (tiny) batch in one grid step; for larger N keep b_tile
  # small so the "parallel" batch axis still has multiple steps (v7x megacore).
  out = attention_refinement_forward(x, params, b_tile=2)
  out = jax.block_until_ready(out)

  ref = jax.block_until_ready(reference_forward(x, params))
  assert out.shape == (N, COUT, H, W)
  # Tolerance accounts for bf16 MXU conv operands (accumulation stays f32).
  max_err = float(jnp.max(jnp.abs(out - ref)))
  assert jnp.allclose(out, ref, atol=5e-2, rtol=5e-2), max_err

  print("KERNEL_OK")
</pallas_src>

<mosaic_0001>
module attributes {stable_mosaic.version = 11 : i64} {
  func.func @arm_kernel(%arg0: i32, %arg1: memref<2x18x72xf32, #tpu.memory_space<vmem>>, %arg2: memref<3x72x128xbf16, #tpu.memory_space<vmem>>, %arg3: memref<1x128xf32, #tpu.memory_space<vmem>>, %arg4: memref<128x128xf32, #tpu.memory_space<vmem>>, %arg5: memref<1x128xf32, #tpu.memory_space<vmem>>, %arg6: memref<2x16x128xf32, #tpu.memory_space<vmem>>) attributes {dimension_semantics = [#tpu.dimension_semantics<parallel>], iteration_bounds = array<i64: 1>, scalar_prefetch = 0 : i64, scratch_operands = 0 : i64, tpu.core_type = #tpu.core_type<tc>, window_params = [{transform_indices = @transform_0, window_bounds = array<i64: 2, 18, 72>}, {pipeline_mode = #tpu.pipeline_mode<synchronous>, transform_indices = @transform_1, window_bounds = array<i64: 3, 72, 128>}, {pipeline_mode = #tpu.pipeline_mode<synchronous>, transform_indices = @transform_2, window_bounds = array<i64: 1, 128>}, {pipeline_mode = #tpu.pipeline_mode<synchronous>, transform_indices = @transform_3, window_bounds = array<i64: 128, 128>}, {pipeline_mode = #tpu.pipeline_mode<synchronous>, transform_indices = @transform_4, window_bounds = array<i64: 1, 128>}, {transform_indices = @transform_5, window_bounds = array<i64: 2, 16, 128>}]} {
    %cst = arith.constant 0.000000e+00 : f32
    %0 = vector.broadcast %cst : f32 to vector<16x128xf32>
    %c0 = arith.constant 0 : index
    %c0_0 = arith.constant 0 : index
    %c0_1 = arith.constant 0 : index
    %1 = vector.load %arg1[%c0, %c0_0, %c0_1] : memref<2x18x72xf32, #tpu.memory_space<vmem>>, vector<1x16x72xf32>
    %2 = vector.shape_cast %1 : vector<1x16x72xf32> to vector<16x72xf32>
    %3 = arith.truncf %2 : vector<16x72xf32> to vector<16x72xbf16>
    %c0_2 = arith.constant 0 : index
    %c0_3 = arith.constant 0 : index
    %c0_4 = arith.constant 0 : index
    %4 = vector.load %arg2[%c0_2, %c0_3, %c0_4] : memref<3x72x128xbf16, #tpu.memory_space<vmem>>, vector<1x72x128xbf16>
    %5 = vector.shape_cast %4 : vector<1x72x128xbf16> to vector<72x128xbf16>
    %cst_5 = arith.constant dense<0.000000e+00> : vector<16x128xf32>
    %6 = tpu.matmul %3, %5, %cst_5 {dimension_numbers = #tpu.dot_dimension_numbers<[1], [0], [0], [1], [0, 0, 1, 1], [], []>} : vector<16x72xbf16>, vector<72x128xbf16>, vector<16x128xf32> -> vector<16x128xf32>
    %7 = arith.addf %0, %6 : vector<16x128xf32>
    %c0_6 = arith.constant 0 : index
    %c1 = arith.constant 1 : index
    %c0_7 = arith.constant 0 : index
    %8 = vector.load %arg1[%c0_6, %c1, %c0_7] : memref<2x18x72xf32, #tpu.memory_space<vmem>>, vector<1x16x72xf32>
    %9 = vector.shape_cast %8 : vector<1x16x72xf32> to vector<16x72xf32>
    %10 = arith.truncf %9 : vector<16x72xf32> to vector<16x72xbf16>
    %c1_8 = arith.constant 1 : index
    %c0_9 = arith.constant 0 : index
    %c0_10 = arith.constant 0 : index
    %11 = vector.load %arg2[%c1_8, %c0_9, %c0_10] : memref<3x72x128xbf16, #tpu.memory_space<vmem>>, vector<1x72x128xbf16>
    %12 = vector.shape_cast %11 : vector<1x72x128xbf16> to vector<72x128xbf16>
    %cst_11 = arith.constant dense<0.000000e+00> : vector<16x128xf32>
    %13 = tpu.matmul %10, %12, %cst_11 {dimension_numbers = #tpu.dot_dimension_numbers<[1], [0], [0], [1], [0, 0, 1, 1], [], []>} : vector<16x72xbf16>, vector<72x128xbf16>, vector<16x128xf32> -> vector<16x128xf32>
    %14 = arith.addf %7, %13 : vector<16x128xf32>
    %c0_12 = arith.constant 0 : index
    %c2 = arith.constant 2 : index
    %c0_13 = arith.constant 0 : index
    %15 = vector.load %arg1[%c0_12, %c2, %c0_13] : memref<2x18x72xf32, #tpu.memory_space<vmem>>, vector<1x16x72xf32>
    %16 = vector.shape_cast %15 : vector<1x16x72xf32> to vector<16x72xf32>
    %17 = arith.truncf %16 : vector<16x72xf32> to vector<16x72xbf16>
    %c2_14 = arith.constant 2 : index
    %c0_15 = arith.constant 0 : index
    %c0_16 = arith.constant 0 : index
    %18 = vector.load %arg2[%c2_14, %c0_15, %c0_16] : memref<3x72x128xbf16, #tpu.memory_space<vmem>>, vector<1x72x128xbf16>
    %19 = vector.shape_cast %18 : vector<1x72x128xbf16> to vector<72x128xbf16>
    %cst_17 = arith.constant dense<0.000000e+00> : vector<16x128xf32>
    %20 = tpu.matmul %17, %19, %cst_17 {dimension_numbers = #tpu.dot_dimension_numbers<[1], [0], [0], [1], [0, 0, 1, 1], [], []>} : vector<16x72xbf16>, vector<72x128xbf16>, vector<16x128xf32> -> vector<16x128xf32>
    %21 = arith.addf %14, %20 : vector<16x128xf32>
    %c0_18 = arith.constant 0 : index
    %c0_19 = arith.constant 0 : index
    %22 = vector.load %arg3[%c0_18, %c0_19] : memref<1x128xf32, #tpu.memory_space<vmem>>, vector<1x128xf32>
    %23 = vector.broadcast %22 : vector<1x128xf32> to vector<16x128xf32>
    %24 = arith.addf %21, %23 : vector<16x128xf32>
    %cst_20 = arith.constant 0.000000e+00 : f32
    %25 = vector.broadcast %cst_20 : f32 to vector<16x128xf32>
    %26 = arith.maximumf %24, %25 : vector<16x128xf32>
    %cst_21 = arith.constant dense<0.000000e+00> : vector<128xf32>
    %27 = vector.multi_reduction <add>, %26, %cst_21 [0] : vector<16x128xf32> to vector<128xf32>
    %28 = vector.shape_cast %27 : vector<128xf32> to vector<1x128xf32>
    %cst_22 = arith.constant 0.000000e+00 : f32
    %29 = vector.broadcast %cst_22 : f32 to vector<16x128xf32>
    %c1_23 = arith.constant 1 : index
    %c0_24 = arith.constant 0 : index
    %c0_25 = arith.constant 0 : index
    %30 = vector.load %arg1[%c1_23, %c0_24, %c0_25] : memref<2x18x72xf32, #tpu.memory_space<vmem>>, vector<1x16x72xf32>
    %31 = vector.shape_cast %30 : vector<1x16x72xf32> to vector<16x72xf32>
    %32 = arith.truncf %31 : vector<16x72xf32> to vector<16x72xbf16>
    %c0_26 = arith.constant 0 : index
    %c0_27 = arith.constant 0 : index
    %c0_28 = arith.constant 0 : index
    %33 = vector.load %arg2[%c0_26, %c0_27, %c0_28] : memref<3x72x128xbf16, #tpu.memory_space<vmem>>, vector<1x72x128xbf16>
    %34 = vector.shape_cast %33 : vector<1x72x128xbf16> to vector<72x128xbf16>
    %cst_29 = arith.constant dense<0.000000e+00> : vector<16x128xf32>
    %35 = tpu.matmul %32, %34, %cst_29 {dimension_numbers = #tpu.dot_dimension_numbers<[1], [0], [0], [1], [0, 0, 1, 1], [], []>} : vector<16x72xbf16>, vector<72x128xbf16>, vector<16x128xf32> -> vector<16x128xf32>
    %36 = arith.addf %29, %35 : vector<16x128xf32>
    %c1_30 = arith.constant 1 : index
    %c1_31 = arith.constant 1 : index
    %c0_32 = arith.constant 0 : index
    %37 = vector.load %arg1[%c1_30, %c1_31, %c0_32] : memref<2x18x72xf32, #tpu.memory_space<vmem>>, vector<1x16x72xf32>
    %38 = vector.shape_cast %37 : vector<1x16x72xf32> to vector<16x72xf32>
    %39 = arith.truncf %38 : vector<16x72xf32> to vector<16x72xbf16>
    %c1_33 = arith.constant 1 : index
    %c0_34 = arith.constant 0 : index
    %c0_35 = arith.constant 0 : index
    %40 = vector.load %arg2[%c1_33, %c0_34, %c0_35] : memref<3x72x128xbf16, #tpu.memory_space<vmem>>, vector<1x72x128xbf16>
    %41 = vector.shape_cast %40 : vector<1x72x128xbf16> to vector<72x128xbf16>
    %cst_36 = arith.constant dense<0.000000e+00> : vector<16x128xf32>
    %42 = tpu.matmul %39, %41, %cst_36 {dimension_numbers = #tpu.dot_dimension_numbers<[1], [0], [0], [1], [0, 0, 1, 1], [], []>} : vector<16x72xbf16>, vector<72x128xbf16>, vector<16x128xf32> -> vector<16x128xf32>
    %43 = arith.addf %36, %42 : vector<16x128xf32>
    %c1_37 = arith.constant 1 : index
    %c2_38 = arith.constant 2 : index
    %c0_39 = arith.constant 0 : index
    %44 = vector.load %arg1[%c1_37, %c2_38, %c0_39] : memref<2x18x72xf32, #tpu.memory_space<vmem>>, vector<1x16x72xf32>
    %45 = vector.shape_cast %44 : vector<1x16x72xf32> to vector<16x72xf32>
    %46 = arith.truncf %45 : vector<16x72xf32> to vector<16x72xbf16>
    %c2_40 = arith.constant 2 : index
    %c0_41 = arith.constant 0 : index
    %c0_42 = arith.constant 0 : index
    %47 = vector.load %arg2[%c2_40, %c0_41, %c0_42] : memref<3x72x128xbf16, #tpu.memory_space<vmem>>, vector<1x72x128xbf16>
    %48 = vector.shape_cast %47 : vector<1x72x128xbf16> to vector<72x128xbf16>
    %cst_43 = arith.constant dense<0.000000e+00> : vector<16x128xf32>
    %49 = tpu.matmul %46, %48, %cst_43 {dimension_numbers = #tpu.dot_dimension_numbers<[1], [0], [0], [1], [0, 0, 1, 1], [], []>} : vector<16x72xbf16>, vector<72x128xbf16>, vector<16x128xf32> -> vector<16x128xf32>
    %50 = arith.addf %43, %49 : vector<16x128xf32>
    %c0_44 = arith.constant 0 : index
    %c0_45 = arith.constant 0 : index
    %51 = vector.load %arg3[%c0_44, %c0_45] : memref<1x128xf32, #tpu.memory_space<vmem>>, vector<1x128xf32>
    %52 = vector.broadcast %51 : vector<1x128xf32> to vector<16x128xf32>
    %53 = arith.addf %50, %52 : vector<16x128xf32>
    %cst_46 = arith.constant 0.000000e+00 : f32
    %54 = vector.broadcast %cst_46 : f32 to vector<16x128xf32>
    %55 = arith.maximumf %53, %54 : vector<16x128xf32>
    %cst_47 = arith.constant dense<0.000000e+00> : vector<128xf32>
    %56 = vector.multi_reduction <add>, %55, %cst_47 [0] : vector<16x128xf32> to vector<128xf32>
    %57 = vector.shape_cast %56 : vector<128xf32> to vector<1x128xf32>
    %58 = tpu.concatenate %28, %57 in 0 : vector<1x128xf32>, vector<1x128xf32> -> vector<2x128xf32>
    %c0_48 = arith.constant 0 : index
    %c0_49 = arith.constant 0 : index
    %59 = vector.load %arg4[%c0_48, %c0_49] : memref<128x128xf32, #tpu.memory_space<vmem>>, vector<128x128xf32>
    %cst_50 = arith.constant dense<0.000000e+00> : vector<2x128xf32>
    %60 = tpu.matmul %58, %59, %cst_50 {dimension_numbers = #tpu.dot_dimension_numbers<[1], [0], [0], [1], [0, 0, 1, 1], [], []>} : vector<2x128xf32>, vector<128x128xf32>, vector<2x128xf32> -> vector<2x128xf32>
    %c0_51 = arith.constant 0 : index
    %c0_52 = arith.constant 0 : index
    %61 = vector.load %arg5[%c0_51, %c0_52] : memref<1x128xf32, #tpu.memory_space<vmem>>, vector<1x128xf32>
    %62 = vector.broadcast %61 : vector<1x128xf32> to vector<2x128xf32>
    %63 = arith.addf %60, %62 : vector<2x128xf32>
    %64 = arith.negf %63 : vector<2x128xf32>
    %65 = math.exp %64 : vector<2x128xf32>
    %cst_53 = arith.constant 1.000000e+00 : f32
    %66 = vector.broadcast %cst_53 : f32 to vector<2x128xf32>
    %67 = arith.addf %66, %65 : vector<2x128xf32>
    %68 = arith.divf %66, %67 : vector<2x128xf32>
    %69 = vector.extract_strided_slice %68 {offsets = [0, 0], sizes = [1, 128], strides = [1, 1]} : vector<2x128xf32> to vector<1x128xf32>
    %70 = vector.broadcast %69 : vector<1x128xf32> to vector<16x128xf32>
    %71 = arith.mulf %26, %70 : vector<16x128xf32>
    %c0_54 = arith.constant 0 : index
    %c0_55 = arith.constant 0 : index
    %c0_56 = arith.constant 0 : index
    %72 = vector.load %arg6[%c0_54, %c0_55, %c0_56] : memref<2x16x128xf32, #tpu.memory_space<vmem>>, vector<1x16x128xf32>
    %73 = vector.shape_cast %72 : vector<1x16x128xf32> to vector<16x128xf32>
    %74 = vector.shape_cast %71 : vector<16x128xf32> to vector<1x16x128xf32>
    tpu.vector_store %arg6[%c0_54, %c0_55, %c0_56], %74 {strides = array<i32>} : memref<2x16x128xf32, #tpu.memory_space<vmem>>, vector<1x16x128xf32>,
    %75 = vector.extract_strided_slice %68 {offsets = [1, 0], sizes = [1, 128], strides = [1, 1]} : vector<2x128xf32> to vector<1x128xf32>
    %76 = vector.broadcast %75 : vector<1x128xf32> to vector<16x128xf32>
    %77 = arith.mulf %55, %76 : vector<16x128xf32>
    %c1_57 = arith.constant 1 : index
    %c0_58 = arith.constant 0 : index
    %c0_59 = arith.constant 0 : index
    %78 = vector.load %arg6[%c1_57, %c0_58, %c0_59] : memref<2x16x128xf32, #tpu.memory_space<vmem>>, vector<1x16x128xf32>
    %79 = vector.shape_cast %78 : vector<1x16x128xf32> to vector<16x128xf32>
    %80 = vector.shape_cast %77 : vector<16x128xf32> to vector<1x16x128xf32>
    tpu.vector_store %arg6[%c1_57, %c0_58, %c0_59], %80 {strides = array<i32>} : memref<2x16x128xf32, #tpu.memory_space<vmem>>, vector<1x16x128xf32>,
    return
  }
  func.func @transform_0(%arg0: i32) -> (i32, i32, i32) {
    %c0_i32 = arith.constant 0 : i32
    %c0_i32_0 = arith.constant 0 : i32
    %c0_i32_1 = arith.constant 0 : i32
    return %arg0, %c0_i32, %c0_i32_0 : i32, i32, i32
  }
  func.func @transform_1(%arg0: i32) -> (i32, i32, i32) {
    %c0_i32 = arith.constant 0 : i32
    %c0_i32_0 = arith.constant 0 : i32
    %c0_i32_1 = arith.constant 0 : i32
    %c0_i32_2 = arith.constant 0 : i32
    return %c0_i32, %c0_i32_0, %c0_i32_1 : i32, i32, i32
  }
  func.func @transform_2(%arg0: i32) -> (i32, i32) {
    %c0_i32 = arith.constant 0 : i32
    %c0_i32_0 = arith.constant 0 : i32
    %c0_i32_1 = arith.constant 0 : i32
    return %c0_i32, %c0_i32_0 : i32, i32
  }
  func.func @transform_3(%arg0: i32) -> (i32, i32) {
    %c0_i32 = arith.constant 0 : i32
    %c0_i32_0 = arith.constant 0 : i32
    %c0_i32_1 = arith.constant 0 : i32
    return %c0_i32, %c0_i32_0 : i32, i32
  }
  func.func @transform_4(%arg0: i32) -> (i32, i32) {
    %c0_i32 = arith.constant 0 : i32
    %c0_i32_0 = arith.constant 0 : i32
    %c0_i32_1 = arith.constant 0 : i32
    return %c0_i32, %c0_i32_0 : i32, i32
  }
  func.func @transform_5(%arg0: i32) -> (i32, i32, i32) {
    %c0_i32 = arith.constant 0 : i32
    %c0_i32_0 = arith.constant 0 : i32
    %c0_i32_1 = arith.constant 0 : i32
    return %arg0, %c0_i32, %c0_i32_0 : i32, i32, i32
  }
}

</mosaic_0001>

<bundles_post_ra>
// kernel: attention_refinement_forward.1
= control target key start
LH: loop header
LB: loop body
LE: loop exit
PB: predicated region body
PF: predicated region fallthrough
CT: control target
= control target key end

     0   :  { %v848_v0 = vmov 0.0   ;;  %vm849_vm0 = vmmov 0   ;;  %vm77_vm1 = vcmask 1043456   ;;  %vm73_vm2 = vcmask 588800   ;;  %s1121_s1 = inlined_call_operand.vmem [shape: bf16[3,72,128], index: 1, kind: input, shape index: {}]   ;;  %s1122_s0 = inlined_call_operand.vmem [shape: f32[2,18,72], index: 0, kind: input, shape index: {}]   ;;  %s1123_s3 = inlined_call_operand.vmem [shape: f32[128,128], index: 3, kind: input, shape index: {}]   ;;  %s1124_s2 = inlined_call_operand.vmem [shape: f32[1,128], index: 2, kind: input, shape index: {}]   ;;  %s1125_s4 = inlined_call_operand.vmem [shape: f32[1,128], index: 4, kind: input, shape index: {}]   ;;  %s1126_s5 = inlined_call_operand.vmem [shape: f32[2,16,128], index: 5, kind: output, shape index: {}]  }
   0x1   :  { %683 = vmatprep.subr.bf16.mxu1 %v848_v0  ;;  %v885_v1 = vld [vmem:[%s1121_s1 + $0x24] sm:$0xff]   ;;  %693 = vmatprep.mubr.msk.bf16.mxu1 %vm849_vm0, %v848_v0  ;;  %v896_v2 = vld [vmem:[%s1121_s1 + $0x2c] sm:$0xff]   ;;  %v903_v3 = vld [vmem:[%s1121_s1 + $0x34] sm:$0xff]   ;;  %v850_v37 = vmov 0.0|0.0   ;;  %vm458_vm3 = vcmask 1040384  }
   0x2   :  { %711 = vmatprep.subr.bf16.mxu0 %v848_v0  ;;  %721 = vmatprep.mubr.msk.bf16.mxu0 %vm849_vm0, %v848_v0  ;;  %v909_v4 = vld [vmem:[%s1121_s1 + $0x48] sm:$0xff]   ;;  %v915_v5 = vld [vmem:[%s1121_s1 + $0x50] sm:$0xff]   ;;  %v921_v6 = vld [vmem:[%s1121_s1 + $0x3c] sm:$0xff]  }
   0x3   :  { %684 = vmatpush3.bf16.msra.mxu1 %v885_v1  ;;  %712 = vmatpush3.bf16.msra.mxu0 %v909_v4  ;;  %v833_v7 = vld [vmem:[%s1121_s1 + $0x44] ss:$0 sps:$4 sm:$0xff]   ;;  %v932_v8 = vld [vmem:[%s1121_s1 + $0x58] sm:$0xff]   ;;  %v34_v10 = vld [vmem:[%s1122_s0 + $0x9] sm:$0xff] }
   0x4   :  { %685 = vmatprep.subr.bf16.mxu1 %v848_v0  ;;  %713 = vmatprep.subr.bf16.mxu0 %v848_v0  ;;  %v33_v9 = vld [vmem:[%s1122_s0 + $0x1] sm:$0xff]  ;;  %v944_v11 = vsel %vm77_vm1, %v833_v7, 0  ;;  %v197_v17 = vld [vmem:[%s1122_s0 + $0xa] sm:$0xff]  ;;  %v840_v22 = vld [vmem:[%s1121_s1 + $0x18] sm:$0xff]  }
   0x5   :  { %v35_v12 = vpack.c.bf16 %v34_v10, %v33_v9  ;;  %v950_v13 = vld [vmem:[%s1121_s1 + $0x60] sm:$0xff]   ;;  %v843_v15 = vld [vmem:[%s1121_s1 + $0x68] ss:$0 sps:$4 sm:$0xff]   ;;  %v838_v21 = vld [vmem:[%s1121_s1 + $0x10] sm:$0xff]  }
   0x6   :  { %v834_v14 = vld [vmem:[%s1121_s1] sm:$0xff]   ;;  %v836_v18 = vld [vmem:[%s1121_s1 + $0x8] sm:$0xff]   ;;  %v974_v19 = vsel %vm77_vm1, %v843_v15, 0  ;;  %v617_v28 = vld [vmem:[%s1122_s0 + $0x18] sm:$0xff] }
   0x7   :  { %686 = vmatpush3.bf16.msra.mxu1 %v896_v2  ;;  %714 = vmatpush3.bf16.msra.mxu0 %v915_v5  ;;  %v196_v16 = vld [vmem:[%s1122_s0 + $0x2] sm:$0xff]  ;;  %v842_v23 = vld [vmem:[%s1121_s1 + $0x20] ss:$0 sps:$4 sm:$0xff]   ;;  %v462_v40 = vld [vmem:[%s1123_s3 + $0x10] sm:$0xff] }
   0x8   :  { %687 = vmatprep.subr.bf16.mxu1 %v848_v0  ;;  %715 = vmatprep.subr.bf16.mxu0 %v848_v0  ;;  %v198_v20 = vpack.c.bf16 %v197_v17, %v196_v16  ;;  %v21_v24 = vld [vmem:[%s1122_s0] sm:$0xff]  ;;  %v22_v25 = vld [vmem:[%s1122_s0 + $0x8] sm:$0xff]  ;;  %v153_v26 = vsel %vm77_vm1, %v842_v23, 0  ;;  %v463_v42 = vld [vmem:[%s1123_s3 + $0x18] sm:$0xff] }
   0x9   :  { %v23_v27 = vpack.c.bf16 %v22_v25, %v21_v24  ;;  %v618_v29 = vld [vmem:[%s1122_s0 + $0x20] sm:$0xff]  ;;  %v461_v39 = vld [vmem:[%s1123_s3 + $0x8] sm:$0xff]  ;;  %v806_v43 = vpack.c.bf16 %v463_v42, %v462_v40  ;;  %v466_v47 = vld [vmem:[%s1123_s3 + $0x30] sm:$0xff] }
   0xa   :  { %v306_v30 = vpack.c.bf16 %v618_v29, %v617_v28  ;;  %v619_v31 = vld [vmem:[%s1122_s0 + $0x19] sm:$0xff]  ;;  %v620_v32 = vld [vmem:[%s1122_s0 + $0x21] sm:$0xff]  ;;  %v470_v53 = vld [vmem:[%s1123_s3 + $0x50] sm:$0xff] }
   0xb   :  { %688 = vmatpush3.bf16.msra.mxu1 %v903_v3  ;;  %716 = vmatpush3.bf16.msra.mxu0 %v932_v8  ;;  %v309_v33 = vpack.c.bf16 %v620_v32, %v619_v31  ;;  %v623_v34 = vld [vmem:[%s1122_s0 + $0x1a] sm:$0xff]  ;;  %v624_v35 = vld [vmem:[%s1122_s0 + $0x22] sm:$0xff]  ;;  %v474_v59 = vld [vmem:[%s1123_s3 + $0x70] sm:$0xff] }
   0xc   :  { %689 = vmatprep.subr.bf16.mxu1 %v848_v0  ;;  %717 = vmatprep.subr.bf16.mxu0 %v848_v0  ;;  %v400_v36 = vpack.c.bf16 %v624_v35, %v623_v34  ;;  %v460_v38 = vld [vmem:[%s1123_s3] sm:$0xff]  ;;  %v465_v45 = vld [vmem:[%s1123_s3 + $0x28] sm:$0xff]  ;;  %v467_v48 = vld [vmem:[%s1123_s3 + $0x38] sm:$0xff] }
   0xd   :  { %v803_v41 = vpack.c.bf16 %v461_v39, %v460_v38  ;;  %v464_v44 = vld [vmem:[%s1123_s3 + $0x20] sm:$0xff]  ;;  %v812_v49 = vpack.c.bf16 %v467_v48, %v466_v47  ;;  %v469_v51 = vld [vmem:[%s1123_s3 + $0x48] sm:$0xff]  ;;  %v471_v54 = vld [vmem:[%s1123_s3 + $0x58] sm:$0xff] }
   0xe   :  { %v809_v46 = vpack.c.bf16 %v465_v45, %v464_v44  ;;  %v468_v50 = vld [vmem:[%s1123_s3 + $0x40] sm:$0xff]  ;;  %v818_v55 = vpack.c.bf16 %v471_v54, %v470_v53  ;;  %v473_v57 = vld [vmem:[%s1123_s3 + $0x68] sm:$0xff]  ;;  %v475_v60 = vld [vmem:[%s1123_s3 + $0x78] sm:$0xff] }
   0xf   :  { %690 = vmatpush3.bf16.msra.mxu1 %v921_v6  ;;  %718 = vmatpush3.bf16.msra.mxu0 %v950_v13  ;;  %v815_v52 = vpack.c.bf16 %v469_v51, %v468_v50  ;;  %v472_v56 = vld [vmem:[%s1123_s3 + $0x60] sm:$0xff]  ;;  %v824_v61 = vpack.c.bf16 %v475_v60, %v474_v59 }
  0x10   :  { %691 = vmatprep.subr.bf16.mxu1 %v848_v0  ;;  %719 = vmatprep.subr.bf16.mxu0 %v848_v0  ;;  %v821_v58 = vpack.c.bf16 %v473_v57, %v472_v56  ;;  %v616_v24 = vld [vmem:[%s1124_s2] ss:$0 sm:$0xff] }
  0x11   :  { %v626_v54 = vld [vmem:[%s1125_s4] ss:$0 sm:$0xff] }
  0x13   :  { %692 = vmatpush3.bf16.msra.mxu1 %v944_v11  ;;  %720 = vmatpush3.bf16.msra.mxu0 %v974_v19 }
  0x14   :  { %697 = vmatprep.subr.bf16.mxu1 %v848_v0  ;;  %739 = vmatprep.subr.bf16.mxu0 %v848_v0 }
  0x16   :  { %694 = vmatmul.mubr.msk.bf16.vlgmr.msra.gmra.mrb[0].mxu1 %vm73_vm2, %v35_v12  ;;  %722 = vmatmul.mubr.msk.bf16.vlgmr.msra.gmra.mrb[0].mxu0 %vm73_vm2, %v198_v20 }
  0x17   :  { %698 = vmatpush3.bf16.msra.mxu1 %v834_v14  ;;  %707 = vmatprep.mubr.msk.bf16.mxu1 %vm849_vm0, %v848_v0 }
  0x18   :  { %699 = vmatprep.subr.bf16.mxu1 %v848_v0  ;;  %740 = vmatpush3.bf16.msra.mxu0 %v834_v14 }
  0x19   :  { %749 = vmatprep.mubr.msk.bf16.mxu0 %vm849_vm0, %v848_v0  ;;  %741 = vmatprep.subr.bf16.mxu0 %v848_v0 }
  0x1b   :  { %700 = vmatpush3.bf16.msra.mxu1 %v836_v18 }
  0x1c   :  { %701 = vmatprep.subr.bf16.mxu1 %v848_v0  ;;  %742 = vmatpush3.bf16.msra.mxu0 %v836_v18 }
  0x1d   :  { %743 = vmatprep.subr.bf16.mxu0 %v848_v0 }
  0x1f   :  { %702 = vmatpush3.bf16.msra.mxu1 %v838_v21 }
  0x20   :  { %703 = vmatprep.subr.bf16.mxu1 %v848_v0  ;;  %744 = vmatpush3.bf16.msra.mxu0 %v838_v21 }
  0x21   :  { %745 = vmatprep.subr.bf16.mxu0 %v848_v0 }
  0x23   :  { %704 = vmatpush3.bf16.msra.mxu1 %v840_v22 }
  0x24   :  { %705 = vmatprep.subr.bf16.mxu1 %v848_v0  ;;  %746 = vmatpush3.bf16.msra.mxu0 %v840_v22 }
  0x25   :  { %747 = vmatprep.subr.bf16.mxu0 %v848_v0 }
  0x27   :  { %706 = vmatpush3.bf16.msra.mxu1 %v153_v26 }
  0x28   :  { %725 = vmatprep.subr.bf16.mxu1 %v848_v0  ;;  %748 = vmatpush3.bf16.msra.mxu0 %v153_v26 }
  0x29   :  { %802 = vmatprep.subr.bf16.mxu0 %v850_v37 }
  0x2a   :  { %708 = vmatmul.mubr.msk.bf16.vlgmr.msra.gmra.mrb[4].mxu1 %vm73_vm2, %v23_v27 }
  0x2b   :  { %726 = vmatpush3.bf16.msra.mxu1 %v885_v1  ;;  %735 = vmatprep.mubr.msk.bf16.mxu1 %vm849_vm0, %v848_v0 }
  0x2c   :  { %727 = vmatprep.subr.bf16.mxu1 %v848_v0  ;;  %750 = vmatmul.mubr.msk.bf16.vlgmr.msra.gmra.mrb[4].mxu0 %vm73_vm2, %v306_v30 }
  0x2d   :  { %799 = vmatprep.mubr.msk.f32.mxu0 %vm849_vm0, %v848_v0  ;;  %804 = vmatpush3.bf16.msra.mxu0 %v803_v41 }
  0x2e   :  { %805 = vmatprep.subr.bf16.mxu0 %v850_v37 }
  0x2f   :  { %728 = vmatpush3.bf16.msra.mxu1 %v896_v2 }
  0x30   :  { %729 = vmatprep.subr.bf16.mxu1 %v848_v0 }
  0x31   :  { %807 = vmatpush3.bf16.msra.mxu0 %v806_v43 }
  0x32   :  { %808 = vmatprep.subr.bf16.mxu0 %v850_v37 }
  0x33   :  { %730 = vmatpush3.bf16.msra.mxu1 %v903_v3 }
  0x34   :  { %731 = vmatprep.subr.bf16.mxu1 %v848_v0 }
  0x35   :  { %810 = vmatpush3.bf16.msra.mxu0 %v809_v46 }
  0x36   :  { %811 = vmatprep.subr.bf16.mxu0 %v850_v37 }
  0x37   :  { %732 = vmatpush3.bf16.msra.mxu1 %v921_v6 }
  0x38   :  { %733 = vmatprep.subr.bf16.mxu1 %v848_v0 }
  0x39   :  { %813 = vmatpush3.bf16.msra.mxu0 %v812_v49 }
  0x3a   :  { %814 = vmatprep.subr.bf16.mxu0 %v850_v37 }
  0x3b   :  { %734 = vmatpush3.bf16.msra.mxu1 %v944_v11 }
  0x3c   :  { %753 = vmatprep.subr.bf16.mxu1 %v848_v0 }
  0x3d   :  { %816 = vmatpush3.bf16.msra.mxu0 %v815_v52 }
  0x3e   :  { %736 = vmatmul.mubr.msk.bf16.vlgmr.msra.gmra.mrb[8].mxu1 %vm73_vm2, %v309_v33  ;;  %817 = vmatprep.subr.bf16.mxu0 %v850_v37 }
  0x3f   :  { %754 = vmatpush3.bf16.msra.mxu1 %v909_v4  ;;  %763 = vmatprep.mubr.msk.bf16.mxu1 %vm849_vm0, %v848_v0 }
  0x40   :  { %755 = vmatprep.subr.bf16.mxu1 %v848_v0 }
  0x41   :  { %819 = vmatpush3.bf16.msra.mxu0 %v818_v55 }
  0x42   :  { %820 = vmatprep.subr.bf16.mxu0 %v850_v37 }
  0x43   :  { %756 = vmatpush3.bf16.msra.mxu1 %v915_v5 }
  0x44   :  { %757 = vmatprep.subr.bf16.mxu1 %v848_v0 }
  0x45   :  { %822 = vmatpush3.bf16.msra.mxu0 %v821_v58 }
  0x46   :  { %823 = vmatprep.subr.bf16.mxu0 %v850_v37 }
  0x47   :  { %758 = vmatpush3.bf16.msra.mxu1 %v932_v8 }
  0x48   :  { %759 = vmatprep.subr.bf16.mxu1 %v848_v0 }
  0x49   :  { %825 = vmatpush3.bf16.msra.mxu0 %v824_v61  ;;  %v559_v61 = vlaneseq }
  0x4b   :  { %760 = vmatpush3.bf16.msra.mxu1 %v950_v13 }
  0x4c   :  { %761 = vmatprep.subr.bf16.mxu1 %v848_v0 }
  0x4f   :  { %762 = vmatpush3.bf16.msra.mxu1 %v974_v19 }
  0x52   :  { %764 = vmatmul.mubr.msk.bf16.vlgmr.msra.gmra.mrb[12].mxu1 %vm73_vm2, %v400_v36 }
  0xe9   :  { %v115_v62 = vpop.f32.mrb[0].mxu1  ;;  %v276_v2 = vpop.f32.mrb[0].mxu0 }
  0xea   :  { %v695_v63 = vpop.f32.mrb[1].mxu1  ;;  %v723_v3 = vpop.f32.mrb[1].mxu0 }
  0xeb   :  { %v118_v0 = vpop.f32.mrb[2].mxu1  ;;  %v279_v4 = vpop.f32.mrb[2].mxu0 }
  0xec   :  { %v696_v1 = vpop.f32.mrb[3].mxu1  ;;  %v724_v5 = vpop.f32.mrb[3].mxu0 }
  0xfd   :  { %v189_v6 = vpop.f32.mrb[4].mxu1 }
  0xfe   :  { %v190_v7 = vadd.f32 %v189_v6, %v115_v62  ;;  %v709_v8 = vpop.f32.mrb[5].mxu1  ;;  %v560_v62 = vshrl.u32 %v559_v61, 7 }
  0xff   :  { %v192_v9 = vpop.f32.mrb[6].mxu1  ;;  %v391_v14 = vpop.f32.mrb[4].mxu0 }
 0x100   :  { %v193_v10 = vadd.f32 %v192_v9, %v118_v0  ;;  %v283_v11 = vadd.f32 %v276_v2, %v190_v7  ;;  %v710_v12 = vpop.f32.mrb[7].mxu1  ;;  %v751_v15 = vpop.f32.mrb[5].mxu0  ;;  %v561_v63 = vsub.s32 0, %v560_v62  ;;  %v569_v0 = vsub.s32 1, %v560_v62 }
 0x101   :  { %v394_v16 = vpop.f32.mrb[6].mxu0 }
 0x102   :  { %v284_v13 = vadd.f32 %v279_v4, %v193_v10  ;;  %v752_v17 = vpop.f32.mrb[7].mxu0  ;;  %v292_v26 = vadd.f32 %v616_v24, %v283_v11 }
 0x104   :  { %v293_v25 = vadd.f32 %v616_v24, %v284_v13  ;;  %v294_v28 = vmax.f32 %v292_v26, 0.0 }
 0x106   :  { %v295_v27 = vmax.f32 %v293_v25, 0.0 }
 0x108   :  { %v296_v29 = vadd.f32 %v295_v27, %v294_v28 }
 0x10a   :  { %v297_v31 = vrot.slane %v296_v29, 4 }
 0x10c   :  { %v298_v38 = vadd.f32 %v297_v31, %v296_v29 }
 0x10e   :  { %v299_v42 = vrot.slane %v298_v38, 2 }
 0x110   :  { %v300_v45 = vadd.f32 %v299_v42, %v298_v38 }
 0x111   :  { %v347_v18 = vpop.f32.mrb[8].mxu1 }
 0x112   :  { %v392_v19 = vadd.f32 %v391_v14, %v347_v18  ;;  %v737_v20 = vpop.f32.mrb[9].mxu1  ;;  %v301_v49 = vrot.slane %v300_v45, 1 }
 0x113   :  { %v350_v21 = vpop.f32.mrb[10].mxu1 }
 0x114   :  { %v395_v22 = vadd.f32 %v394_v16, %v350_v21  ;;  %v738_v23 = vpop.f32.mrb[11].mxu1  ;;  %v302_v51 = vadd.f32 %v301_v49, %v300_v45 }
 0x125   :  { %v438_v30 = vpop.f32.mrb[12].mxu1 }
 0x126   :  { %v445_v32 = vadd.f32 %v438_v30, %v392_v19  ;;  %v765_v33 = vpop.f32.mrb[13].mxu1 }
 0x127   :  { %v441_v34 = vpop.f32.mrb[14].mxu1 }
 0x128   :  { %v447_v35 = vadd.f32 %v616_v24, %v445_v32  ;;  %v446_v36 = vadd.f32 %v441_v34, %v395_v22  ;;  %v766_v37 = vpop.f32.mrb[15].mxu1 }
 0x12a   :  { %v448_v39 = vadd.f32 %v616_v24, %v446_v36  ;;  %v449_v40 = vmax.f32 %v447_v35, 0.0 }
 0x12c   :  { %v450_v41 = vmax.f32 %v448_v39, 0.0 }
 0x12e   :  { %v451_v43 = vadd.f32 %v450_v41, %v449_v40 }
 0x130   :  { %v452_v44 = vrot.slane %v451_v43, 4 }
 0x132   :  { %v453_v46 = vadd.f32 %v452_v44, %v451_v43 }
 0x134   :  { %v454_v47 = vrot.slane %v453_v46, 2 }
 0x136   :  { %v455_v48 = vadd.f32 %v454_v47, %v453_v46 }
 0x138   :  { %v456_v50 = vrot.slane %v455_v48, 1 }
 0x13a   :  { %v457_v52 = vadd.f32 %v456_v50, %v455_v48 }
 0x13c   :  { %v459_v53 = vsel %vm458_vm3, %v302_v51, %v457_v52 }
 0x13d   :  { %800 = vmatmul.mubr.f32.vlgmr.msra.gmra.mrb[8].mxu0 %v459_v53 }
 0x210   :  { %v549_v55 = vpop.f32.mrb[8].mxu0 }
 0x211   :  { %v550_v56 = vadd.f32 %v626_v54, %v549_v55  ;;  %v801_v57 = vpop.f32.mrb[9].mxu0 }
 0x213   :  { %v627_v58 = vmul.f32 -1.442695, %v550_v56 }
 0x215   :  { %844 = vpow2.f32 %v627_v58 }
 0x21f   :  { %v845_v59 = vpop.eup %844 }
 0x220   :  { %v556_v60 = vadd.f32 1.0, %v845_v59 }
 0x222   :  { %846 = vrcp.f32 %v556_v60 }
 0x22c   :  { %v847_v1 = vpop.eup %846 }
 0x22d   :  { %v562_v2 = vrot.slane %v847_v1, %v561_v63  ;;  %v570_v3 = vrot.slane %v847_v1, %v569_v0 }
 0x22f   :  { %v563_v4 = vmul.f32 %v562_v2, %v294_v28  ;;  %v564_v5 = vmul.f32 %v562_v2, %v295_v27  ;;  %v571_v6 = vmul.f32 %v570_v3, %v449_v40  ;;  %v572_v7 = vmul.f32 %v570_v3, %v450_v41 }
 0x231   :  { %565 = vst [vmem:[%s1126_s5] sm:$0xff] %v563_v4  ;;  %566 = vst [vmem:[%s1126_s5 + $0x8] sm:$0xff] %v564_v5 }
 0x232   :  { %628 = vst [vmem:[%s1126_s5 + $0x10] sm:$0xff] %v571_v6  ;;  %629 = vst [vmem:[%s1126_s5 + $0x18] sm:$0xff] %v572_v7 }

</bundles_post_ra>
